<compile_context>
chip_gen: v5e
topology: v5e:2x2
jax: 0.10.0
libtpu: 0.0.40
codegen_flags: <defaults>
</compile_context>

<pallas_src>
import jax
import jax.numpy as jnp
from jax.experimental import pallas as pl
from jax.experimental.pallas import tpu as pltpu

E = 30            # ensemble size (fixed by the module)
EH_PAD = 1024     # padded fused hidden dim  (E*H = 960 -> 1024, multiple of 128)
N_PAD = 128       # padded logits dim        (E   =  30 -> 128, one full lane group)


def _ensemble_kernel(x_ref, w1f_ref, b1f_ref, w2bd_ref, b2f_ref, o_ref):
    # fc1 + ReLU for all ensemble members at once: (B, I) @ (I, EH_PAD) -> (B, EH_PAD)
    h = jnp.dot(x_ref[...], w1f_ref[...], preferred_element_type=jnp.float32)
    h = jnp.maximum(h + b1f_ref[...], 0.0)          # padded columns stay exactly 0

    # fc2 for all members at once via the padded block-diagonal weight matrix:
    # (B, EH_PAD) @ (EH_PAD, N_PAD) -> (B, N_PAD);
    # logits[b, e] = sum_h h[b, e*H+h] * W2[e, h]  for e < 30; padded e get bias -1e9.
    logits = jnp.dot(h, w2bd_ref[...], preferred_element_type=jnp.float32)
    logits = logits + b2f_ref[...]

    probs = jax.nn.sigmoid(logits)                   # padded columns -> exactly 0.0
    # Ensemble mean over the REAL 30 members (padded lanes contribute 0); single store.
    o_ref[...] = jnp.sum(probs, axis=-1, keepdims=True) * (1.0 / E)


def prepare_params(w1, b1, w2, b2):
    """One-time fold of the per-member weights into fused, lane-padded matrices.

    w1: (E, I, H); b1: (E, 1, H); w2: (E, H, 1); b2: (E, 1, 1)
    Returns (w1f, b1f, w2bd, b2f) ready to be passed to mlp_ensemble_forward.
    """
    ens, I, H = w1.shape
    assert ens == E and ens * H <= EH_PAD and ens <= N_PAD

    # Fuse fc1 across the ensemble: columns ordered ensemble-major, hidden-minor.
    w1f = jnp.transpose(w1, (1, 0, 2)).reshape(I, ens * H)          # (I, E*H)
    b1f = b1.reshape(1, ens * H)                                    # (1, E*H)
    w1f = jnp.pad(w1f, ((0, 0), (0, EH_PAD - ens * H)))             # (I, EH_PAD)
    b1f = jnp.pad(b1f, ((0, 0), (0, EH_PAD - ens * H)))             # (1, EH_PAD)

    # Fold fc2 into one block-diagonal matrix: W2bd[e*H + h, e] = W2[e, h, 0].
    w2bd = jnp.repeat(jnp.eye(ens, dtype=w2.dtype), H, axis=0) * w2.reshape(ens * H, 1)
    w2bd = jnp.pad(w2bd, ((0, EH_PAD - ens * H), (0, N_PAD - ens)))  # (EH_PAD, N_PAD)

    # Fused fc2 bias; padded lanes get -1e9 so sigmoid() -> exactly 0.
    b2f = jnp.pad(b2.reshape(1, ens), ((0, 0), (0, N_PAD - ens)),
                  constant_values=-1e9)                              # (1, N_PAD)

    return w1f, b1f, w2bd, b2f


def mlp_ensemble_forward(x, prepared):
    """x: (B, I); prepared = prepare_params(w1, b1, w2, b2)."""
    w1f, b1f, w2bd, b2f = prepared
    B = x.shape[0]

    vmem = pl.BlockSpec(memory_space=pltpu.MemorySpace.VMEM)
    return pl.pallas_call(
        _ensemble_kernel,
        out_shape=jax.ShapeDtypeStruct((B, 1), jnp.float32),
        in_specs=[vmem, vmem, vmem, vmem, vmem],   # full arrays, no grid, no pipeline
        out_specs=vmem,
    )(x, w1f, b1f, w2bd, b2f)
    # TODO(synk): if B ever grows large, add a "parallel" batch grid axis
    # (tm~256-512) so v7x's second TensorCore is used; unnecessary at toy sizes.


def init_params(key, input_size, hidden_size):
    """Deterministic init mimicking nn.Linear (uniform +-1/sqrt(fan_in))."""
    k1, k2, k3, k4 = jax.random.split(key, 4)
    lim1 = 1.0 / jnp.sqrt(jnp.float32(input_size))
    lim2 = 1.0 / jnp.sqrt(jnp.float32(hidden_size))
    w1 = jax.random.uniform(k1, (E, input_size, hidden_size), jnp.float32, -lim1, lim1)
    b1 = jax.random.uniform(k2, (E, 1, hidden_size), jnp.float32, -lim1, lim1)
    w2 = jax.random.uniform(k3, (E, hidden_size, 1), jnp.float32, -lim2, lim2)
    b2 = jax.random.uniform(k4, (E, 1, 1), jnp.float32, -lim2, lim2)
    return w1, b1, w2, b2


def reference_forward(x, w1, b1, w2, b2):
    h = jnp.maximum(jnp.einsum("bi,eih->ebh", x, w1) + b1, 0.0)      # (E, B, H)
    o = jax.nn.sigmoid(jnp.einsum("ebh,eho->ebo", h, w2) + b2)        # (E, B, 1)
    return o.mean(axis=0)                                             # (B, 1)


if __name__ == "__main__":
    batch, input_size, hidden_size = 8, 16, 32

    key = jax.random.PRNGKey(0)
    kx, kp = jax.random.split(key)
    x = jax.random.normal(kx, (batch, input_size), jnp.float32)
    w1, b1, w2, b2 = init_params(kp, input_size, hidden_size)

    # One-time parameter preparation (hoisted out of the forward path).
    prepared = tuple(jax.block_until_ready(p) for p in prepare_params(w1, b1, w2, b2))

    out = mlp_ensemble_forward(x, prepared)
    out = jax.block_until_ready(out)

    ref = reference_forward(x, w1, b1, w2, b2)
    assert out.shape == (batch, 1)
    assert jnp.allclose(out, ref, atol=1e-5, rtol=1e-5), (out, ref)

    print("KERNEL_OK")
</pallas_src>

<mosaic_0001>
module attributes {stable_mosaic.version = 11 : i64} {
  func.func @_ensemble_kernel(%arg0: memref<8x16xf32, #tpu.memory_space<vmem>>, %arg1: memref<16x1024xf32, #tpu.memory_space<vmem>>, %arg2: memref<1x1024xf32, #tpu.memory_space<vmem>>, %arg3: memref<1024x128xf32, #tpu.memory_space<vmem>>, %arg4: memref<1x128xf32, #tpu.memory_space<vmem>>, %arg5: memref<8x1xf32, #tpu.memory_space<vmem>>) attributes {dimension_semantics = [], scalar_prefetch = 0 : i64, scratch_operands = 0 : i64, tpu.core_type = #tpu.core_type<tc>} {
    %c0 = arith.constant 0 : index
    %c0_0 = arith.constant 0 : index
    %0 = vector.load %arg0[%c0, %c0_0] : memref<8x16xf32, #tpu.memory_space<vmem>>, vector<8x16xf32>
    %c0_1 = arith.constant 0 : index
    %c0_2 = arith.constant 0 : index
    %1 = vector.load %arg1[%c0_1, %c0_2] : memref<16x1024xf32, #tpu.memory_space<vmem>>, vector<16x1024xf32>
    %cst = arith.constant dense<0.000000e+00> : vector<8x1024xf32>
    %2 = tpu.matmul %0, %1, %cst {dimension_numbers = #tpu.dot_dimension_numbers<[1], [0], [0], [1], [0, 0, 1, 1], [], []>} : vector<8x16xf32>, vector<16x1024xf32>, vector<8x1024xf32> -> vector<8x1024xf32>
    %c0_3 = arith.constant 0 : index
    %c0_4 = arith.constant 0 : index
    %3 = vector.load %arg2[%c0_3, %c0_4] : memref<1x1024xf32, #tpu.memory_space<vmem>>, vector<1x1024xf32>
    %4 = vector.broadcast %3 : vector<1x1024xf32> to vector<8x1024xf32>
    %5 = arith.addf %2, %4 : vector<8x1024xf32>
    %cst_5 = arith.constant 0.000000e+00 : f32
    %6 = vector.broadcast %cst_5 : f32 to vector<8x1024xf32>
    %7 = arith.maximumf %5, %6 : vector<8x1024xf32>
    %c0_6 = arith.constant 0 : index
    %c0_7 = arith.constant 0 : index
    %8 = vector.load %arg3[%c0_6, %c0_7] : memref<1024x128xf32, #tpu.memory_space<vmem>>, vector<1024x128xf32>
    %cst_8 = arith.constant dense<0.000000e+00> : vector<8x128xf32>
    %9 = tpu.matmul %7, %8, %cst_8 {dimension_numbers = #tpu.dot_dimension_numbers<[1], [0], [0], [1], [0, 0, 1, 1], [], []>} : vector<8x1024xf32>, vector<1024x128xf32>, vector<8x128xf32> -> vector<8x128xf32>
    %c0_9 = arith.constant 0 : index
    %c0_10 = arith.constant 0 : index
    %10 = vector.load %arg4[%c0_9, %c0_10] : memref<1x128xf32, #tpu.memory_space<vmem>>, vector<1x128xf32>
    %11 = vector.broadcast %10 : vector<1x128xf32> to vector<8x128xf32>
    %12 = arith.addf %9, %11 : vector<8x128xf32>
    %13 = arith.negf %12 : vector<8x128xf32>
    %14 = math.exp %13 : vector<8x128xf32>
    %cst_11 = arith.constant 1.000000e+00 : f32
    %15 = vector.broadcast %cst_11 : f32 to vector<8x128xf32>
    %16 = arith.addf %15, %14 : vector<8x128xf32>
    %17 = arith.divf %15, %16 : vector<8x128xf32>
    %cst_12 = arith.constant dense<0.000000e+00> : vector<8xf32>
    %18 = vector.multi_reduction <add>, %17, %cst_12 [1] : vector<8x128xf32> to vector<8xf32>
    %19 = vector.shape_cast %18 : vector<8xf32> to vector<8x1xf32>
    %cst_13 = arith.constant 0.0333333351 : f32
    %20 = vector.broadcast %cst_13 : f32 to vector<8x1xf32>
    %21 = arith.mulf %19, %20 : vector<8x1xf32>
    %c0_14 = arith.constant 0 : index
    %c0_15 = arith.constant 0 : index
    %22 = vector.load %arg5[%c0_14, %c0_15] : memref<8x1xf32, #tpu.memory_space<vmem>>, vector<8x1xf32>
    tpu.vector_store %arg5[%c0_14, %c0_15], %21 {strides = array<i32>} : memref<8x1xf32, #tpu.memory_space<vmem>>, vector<8x1xf32>,
    return
  }
}

</mosaic_0001>

<bundles_post_ra>
// kernel: tpu_custom_call.1
= control target key start
LH: loop header
LB: loop body
LE: loop exit
PB: predicated region body
PF: predicated region fallthrough
CT: control target
= control target key end

     0   :  { %10 = vsyncpa [#allocation3], 0  ;;  %s797_s0 = inlined_call_operand.hbm [shape: f32[8,16], index: 0, kind: input, shape index: {}]   ;;  %s798_s1 = inlined_call_operand.hbm [shape: f32[16,1024], index: 1, kind: input, shape index: {}]   ;;  %s799_s2 = inlined_call_operand.hbm [shape: f32[1,1024], index: 2, kind: input, shape index: {}]   ;;  %s800_s3 = inlined_call_operand.hbm [shape: f32[1024,128], index: 3, kind: input, shape index: {}]   ;;  %s801_s4 = inlined_call_operand.vmem [shape: f32[1,128], index: 4, kind: input, shape index: {}]   ;;  %s802_s5 = inlined_call_operand.vmem [shape: f32[8,1], index: 5, kind: output, shape index: {}]  }
   0x1   :  { %11 = vsyncpa [#allocation5], 0  ;;  %s28_s20 = sshll.u32 %s798_s1, 4  ;;  %s29_s20 = int_to_ptr.hbm [resolvable:$true] %s28_s20 }
   0x2   :  { %12 = vsyncpa [#allocation8], 0  ;;  %s733_s21 = smov [#allocation4]   ;;  %s18_s25 = sshll.u32 %s797_s0, 4  ;;  %s19_s25 = int_to_ptr.hbm [resolvable:$true] %s18_s25 }
   0x3   :  { %s30_s22 = sshll.u32 %s733_s21, 4  ;;  %s734_s26 = smov 1024   ;;  %s31_s22 = int_to_ptr.vmem [resolvable:$true] %s30_s22 }
   0x4   :  { %s735_s27 = smov 64   ;;  %s736_s28 = smov [#allocation2]  }
   0x5   :  { %36 = dma.hbm_to_vmem [thread:$0]  %s29_s20, 2048, %s31_s22, [#allocation5], %s734_s26, %s734_s26, %s735_s27  }
   0x6   :  { %s20_s29 = sshll.u32 %s736_s28, 4  ;;  %s42_s7 = sshll.u32 %s799_s2, 4  ;;  %s21_s29 = int_to_ptr.vmem [resolvable:$true] %s20_s29  ;;  %s43_s7 = int_to_ptr.hbm [resolvable:$true] %s42_s7 }
   0x7   :  { %23 = dma.hbm_to_vmem [thread:$0]  %s19_s25, 128, %s21_s29, [#allocation3]  }
   0x8   :  { %s52_s9 = sshll.u32 %s800_s3, 4  ;;  %s737_s10 = smov [#allocation6]   ;;  %s53_s9 = int_to_ptr.hbm [resolvable:$true] %s52_s9 }
   0x9   :  { %s44_s11 = sshll.u32 %s737_s10, 4  ;;  %s738_s0 = smov [#allocation7]   ;;  %s45_s11 = int_to_ptr.vmem [resolvable:$true] %s44_s11 }
   0xa   :  { %47 = dma.hbm_to_vmem [thread:$0]  %s43_s7, 128, %s45_s11, [#allocation5]  }
   0xb   :  { %s54_s12 = sshll.u32 %s738_s0, 4  ;;  %s739_s13 = smov 128   ;;  %s55_s12 = int_to_ptr.vmem [resolvable:$true] %s54_s12 }
   0xc   :  { %s740_s14 = smov 8  }
   0xd   :  { %60 = dma.hbm_to_vmem [thread:$0]  %s53_s9, 16384, %s55_s12, [#allocation8], %s739_s13, %s739_s13, %s740_s14  }
   0xe   :  { %727 = dma.done.wait [#allocation3], 128  }
   0xf   :  { %728 = vsyncadd [#allocation3], 4294967168 }
  0x10   :  { %729 = dma.done.wait [#allocation5], 2176  }
  0x11   :  { %730 = vsyncadd [#allocation5], 4294965120 }
  0x12   :  { %731 = dma.done.wait [#allocation8], 16384  }
  0x13   :  { %732 = vsyncadd [#allocation8], 4294950912  ;;  %v90_v0 = vld [vmem:[#allocation4 + $0x50] sm:$0xff]  ;;  %v91_v2 = vld [vmem:[#allocation4 + $0x58] sm:$0xff]  ;;  %vm114_vm0 = vcmask 130048   ;;  %vm600_vm5 = vcmask 7168  }
  0x14   :  { %v82_v1 = vld [vmem:[#allocation4 + $0x10] sm:$0xff]  ;;  %172 = vmatpush.msra.mxu2 %v90_v0  ;;  %192 = vmatpush.msra.mxu3 %v91_v2  ;;  %v79_v3 = vld [vmem:[#allocation2] sm:$0xff]  ;;  %v88_v7 = vld [vmem:[#allocation4 + $0x40] sm:$0xff] }
  0x15   :  { %v83_v4 = vld [vmem:[#allocation4 + $0x18] sm:$0xff]  ;;  %v94_v5 = vld [vmem:[#allocation4 + $0x70] sm:$0xff]  ;;  %v89_v8 = vld [vmem:[#allocation4 + $0x48] sm:$0xff]  ;;  %132 = vmatpush.msra.mxu0 %v88_v7 }
  0x16   :  { %v95_v6 = vld [vmem:[#allocation4 + $0x78] sm:$0xff]  ;;  %173 = vmatpush.msra.mxu2 %v82_v1  ;;  %193 = vmatpush.msra.mxu3 %v83_v4  ;;  %v86_v9 = vld [vmem:[#allocation4 + $0x30] sm:$0xff]  ;;  %v80_v11 = vld [vmem:[#allocation4] sm:$0xff] }
  0x17   :  { %611 = vmatmul.msk.f32.vlgmr.msra.gmra.mxu2 %vm114_vm0, %v79_v3  ;;  %612 = vmatmul.msk.f32.vlgmr.msra.gmra.mxu3 %vm114_vm0, %v79_v3  ;;  %v87_v10 = vld [vmem:[#allocation4 + $0x38] sm:$0xff]  ;;  %v81_v12 = vld [vmem:[#allocation4 + $0x8] sm:$0xff]  ;;  %v92_v13 = vld [vmem:[#allocation4 + $0x60] sm:$0xff] }
  0x18   :  { %252 = vmatpush.msrb.mxu2 %v94_v5  ;;  %272 = vmatpush.msrb.mxu3 %v95_v6  ;;  %v93_v14 = vld [vmem:[#allocation4 + $0x68] sm:$0xff]  ;;  %v333_v15 = vld [vmem:[#allocation7 + $0x178] sm:$0xff]  ;;  %v332_v20 = vld [vmem:[#allocation7 + $0x170] sm:$0xff] }
  0x19   :  { %152 = vmatpush.msra.mxu1 %v89_v8  ;;  %133 = vmatpush.msra.mxu0 %v80_v11  ;;  %v349_v16 = vld [vmem:[#allocation7 + $0x1f8] sm:$0xff]  ;;  %v85_v18 = vld [vmem:[#allocation4 + $0x28] sm:$0xff]  ;;  %v348_v22 = vld [vmem:[#allocation7 + $0x1f0] sm:$0xff] }
  0x1a   :  { %253 = vmatpush.msrb.mxu2 %v86_v9  ;;  %273 = vmatpush.msrb.mxu3 %v87_v10  ;;  %v84_v17 = vld [vmem:[#allocation4 + $0x20] sm:$0xff]  ;;  %v300_v23 = vld [vmem:[#allocation7 + $0x70] sm:$0xff]  ;;  %v331_v24 = vld [vmem:[#allocation7 + $0x168] sm:$0xff] }
  0x1b   :  { %153 = vmatpush.msra.mxu1 %v81_v12  ;;  %609 = vmatmul.msk.f32.vlgmr.msra.gmra.mxu0 %vm114_vm0, %v79_v3  ;;  %v301_v19 = vld [vmem:[#allocation7 + $0x78] sm:$0xff]  ;;  %v299_v25 = vld [vmem:[#allocation7 + $0x68] sm:$0xff]  ;;  %v316_v26 = vld [vmem:[#allocation7 + $0xf0] sm:$0xff] }
  0x1c   :  { %610 = vmatmul.msk.f32.vlgmr.msra.gmra.mxu1 %vm114_vm0, %v79_v3  ;;  %212 = vmatpush.msrb.mxu0 %v92_v13  ;;  %v317_v21 = vld [vmem:[#allocation7 + $0xf8] sm:$0xff]  ;;  %v330_v27 = vld [vmem:[#allocation7 + $0x160] sm:$0xff]  ;;  %v347_v28 = vld [vmem:[#allocation7 + $0x1e8] sm:$0xff] }
  0x1d   :  { %232 = vmatpush.msrb.mxu1 %v93_v14  ;;  %458 = vmatpush.msra.mxu2 %v333_v15  ;;  %v298_v29 = vld [vmem:[#allocation7 + $0x60] sm:$0xff]  ;;  %v315_v30 = vld [vmem:[#allocation7 + $0xe8] sm:$0xff]  ;;  %v329_v31 = vld [vmem:[#allocation7 + $0x158] sm:$0xff] }
  0x1e   :  { %478 = vmatpush.msra.mxu3 %v349_v16  ;;  %213 = vmatpush.msrb.mxu0 %v84_v17  ;;  %v346_v32 = vld [vmem:[#allocation7 + $0x1e0] sm:$0xff]  ;;  %v297_v33 = vld [vmem:[#allocation7 + $0x58] sm:$0xff]  ;;  %v328_v35 = vld [vmem:[#allocation7 + $0x150] sm:$0xff] }
  0x1f   :  { %615 = vmatmul.msk.f32.vlgmr.msrb.gmra.mxu2 %vm114_vm0, %v79_v3  ;;  %616 = vmatmul.msk.f32.vlgmr.msrb.gmra.mxu3 %vm114_vm0, %v79_v3  ;;  %v314_v34 = vld [vmem:[#allocation7 + $0xe0] sm:$0xff]  ;;  %v345_v36 = vld [vmem:[#allocation7 + $0x1d8] sm:$0xff]  ;;  %v296_v37 = vld [vmem:[#allocation7 + $0x50] sm:$0xff] }
  0x20   :  { %233 = vmatpush.msrb.mxu1 %v85_v18  ;;  %418 = vmatpush.msra.mxu0 %v301_v19  ;;  %v313_v38 = vld [vmem:[#allocation7 + $0xd8] sm:$0xff]  ;;  %v327_v39 = vld [vmem:[#allocation7 + $0x148] sm:$0xff]  ;;  %v344_v40 = vld [vmem:[#allocation7 + $0x1d0] sm:$0xff] }
  0x21   :  { %459 = vmatpush.msra.mxu2 %v332_v20  ;;  %479 = vmatpush.msra.mxu3 %v348_v22  ;;  %v295_v41 = vld [vmem:[#allocation7 + $0x48] sm:$0xff]  ;;  %v312_v42 = vld [vmem:[#allocation7 + $0xd0] sm:$0xff]  ;;  %v326_v43 = vld [vmem:[#allocation7 + $0x140] sm:$0xff] }
  0x22   :  { %438 = vmatpush.msra.mxu1 %v317_v21  ;;  %419 = vmatpush.msra.mxu0 %v300_v23  ;;  %v343_v44 = vld [vmem:[#allocation7 + $0x1c8] sm:$0xff]  ;;  %v294_v45 = vld [vmem:[#allocation7 + $0x40] sm:$0xff]  ;;  %v325_v47 = vld [vmem:[#allocation7 + $0x138] sm:$0xff] }
  0x23   :  { %460 = vmatpush.msra.mxu2 %v331_v24  ;;  %613 = vmatmul.msk.f32.vlgmr.msrb.gmra.mxu0 %vm114_vm0, %v79_v3  ;;  %v311_v46 = vld [vmem:[#allocation7 + $0xc8] sm:$0xff]  ;;  %v342_v48 = vld [vmem:[#allocation7 + $0x1c0] sm:$0xff]  ;;  %v293_v49 = vld [vmem:[#allocation7 + $0x38] sm:$0xff] }
  0x24   :  { %614 = vmatmul.msk.f32.vlgmr.msrb.gmra.mxu1 %vm114_vm0, %v79_v3  ;;  %420 = vmatpush.msra.mxu0 %v299_v25  ;;  %v310_v50 = vld [vmem:[#allocation7 + $0xc0] sm:$0xff]  ;;  %v324_v51 = vld [vmem:[#allocation7 + $0x130] sm:$0xff]  ;;  %v341_v52 = vld [vmem:[#allocation7 + $0x1b8] sm:$0xff] }
  0x25   :  { %439 = vmatpush.msra.mxu1 %v316_v26  ;;  %461 = vmatpush.msra.mxu2 %v330_v27  ;;  %v292_v53 = vld [vmem:[#allocation7 + $0x30] sm:$0xff]  ;;  %v309_v54 = vld [vmem:[#allocation7 + $0xb8] sm:$0xff]  ;;  %v323_v55 = vld [vmem:[#allocation7 + $0x128] sm:$0xff] }
  0x26   :  { %480 = vmatpush.msra.mxu3 %v347_v28  ;;  %421 = vmatpush.msra.mxu0 %v298_v29  ;;  %v340_v56 = vld [vmem:[#allocation7 + $0x1b0] sm:$0xff]  ;;  %v291_v57 = vld [vmem:[#allocation7 + $0x28] sm:$0xff]  ;;  %v322_v59 = vld [vmem:[#allocation7 + $0x120] sm:$0xff] }
  0x27   :  { %440 = vmatpush.msra.mxu1 %v315_v30  ;;  %462 = vmatpush.msra.mxu2 %v329_v31  ;;  %v308_v58 = vld [vmem:[#allocation7 + $0xb0] sm:$0xff]  ;;  %v339_v60 = vld [vmem:[#allocation7 + $0x1a8] sm:$0xff]  ;;  %v290_v61 = vld [vmem:[#allocation7 + $0x20] sm:$0xff] }
  0x28   :  { %481 = vmatpush.msra.mxu3 %v346_v32  ;;  %422 = vmatpush.msra.mxu0 %v297_v33  ;;  %v307_v62 = vld [vmem:[#allocation7 + $0xa8] sm:$0xff]  ;;  %v321_v63 = vld [vmem:[#allocation7 + $0x118] sm:$0xff]  ;;  %v338_v0 = vld [vmem:[#allocation7 + $0x1a0] sm:$0xff] }
  0x29   :  { %441 = vmatpush.msra.mxu1 %v314_v34  ;;  %463 = vmatpush.msra.mxu2 %v328_v35  ;;  %v289_v1 = vld [vmem:[#allocation7 + $0x18] sm:$0xff]  ;;  %v306_v2 = vld [vmem:[#allocation7 + $0xa0] sm:$0xff]  ;;  %v320_v3 = vld [vmem:[#allocation7 + $0x110] sm:$0xff] }
  0x2a   :  { %482 = vmatpush.msra.mxu3 %v345_v36  ;;  %423 = vmatpush.msra.mxu0 %v296_v37  ;;  %v337_v4 = vld [vmem:[#allocation7 + $0x198] sm:$0xff]  ;;  %v288_v5 = vld [vmem:[#allocation7 + $0x10] sm:$0xff]  ;;  %v319_v7 = vld [vmem:[#allocation7 + $0x108] sm:$0xff] }
  0x2b   :  { %442 = vmatpush.msra.mxu1 %v313_v38  ;;  %464 = vmatpush.msra.mxu2 %v327_v39  ;;  %v305_v6 = vld [vmem:[#allocation7 + $0x98] sm:$0xff]  ;;  %v336_v8 = vld [vmem:[#allocation7 + $0x190] sm:$0xff]  ;;  %v287_v9 = vld [vmem:[#allocation7 + $0x8] sm:$0xff] }
  0x2c   :  { %483 = vmatpush.msra.mxu3 %v344_v40  ;;  %424 = vmatpush.msra.mxu0 %v295_v41  ;;  %v304_v10 = vld [vmem:[#allocation7 + $0x90] sm:$0xff]  ;;  %v318_v11 = vld [vmem:[#allocation7 + $0x100] sm:$0xff]  ;;  %v335_v12 = vld [vmem:[#allocation7 + $0x188] sm:$0xff] }
  0x2d   :  { %443 = vmatpush.msra.mxu1 %v312_v42  ;;  %465 = vmatpush.msra.mxu2 %v326_v43  ;;  %v397_v13 = vld [vmem:[#allocation7 + $0x378] sm:$0xff]  ;;  %v286_v14 = vld [vmem:[#allocation7] sm:$0xff]  ;;  %v303_v15 = vld [vmem:[#allocation7 + $0x88] sm:$0xff] }
  0x2e   :  { %484 = vmatpush.msra.mxu3 %v343_v44  ;;  %425 = vmatpush.msra.mxu0 %v294_v45  ;;  %v334_v16 = vld [vmem:[#allocation7 + $0x180] sm:$0xff]  ;;  %v365_v17 = vld [vmem:[#allocation7 + $0x278] sm:$0xff]  ;;  %v396_v18 = vld [vmem:[#allocation7 + $0x370] sm:$0xff] }
  0x2f   :  { %444 = vmatpush.msra.mxu1 %v311_v46  ;;  %466 = vmatpush.msra.mxu2 %v325_v47  ;;  %v413_v19 = vld [vmem:[#allocation7 + $0x3f8] sm:$0xff]  ;;  %v302_v20 = vld [vmem:[#allocation7 + $0x80] sm:$0xff]  ;;  %v364_v21 = vld [vmem:[#allocation7 + $0x270] sm:$0xff] }
  0x30   :  { %485 = vmatpush.msra.mxu3 %v342_v48  ;;  %426 = vmatpush.msra.mxu0 %v293_v49  ;;  %v381_v22 = vld [vmem:[#allocation7 + $0x2f8] sm:$0xff]  ;;  %v395_v23 = vld [vmem:[#allocation7 + $0x368] sm:$0xff]  ;;  %v412_v24 = vld [vmem:[#allocation7 + $0x3f0] sm:$0xff] }
  0x31   :  { %445 = vmatpush.msra.mxu1 %v310_v50  ;;  %467 = vmatpush.msra.mxu2 %v324_v51  ;;  %v363_v25 = vld [vmem:[#allocation7 + $0x268] sm:$0xff]  ;;  %v380_v26 = vld [vmem:[#allocation7 + $0x2f0] sm:$0xff]  ;;  %v394_v27 = vld [vmem:[#allocation7 + $0x360] sm:$0xff] }
  0x32   :  { %486 = vmatpush.msra.mxu3 %v341_v52  ;;  %427 = vmatpush.msra.mxu0 %v292_v53  ;;  %v411_v28 = vld [vmem:[#allocation7 + $0x3e8] sm:$0xff]  ;;  %v362_v29 = vld [vmem:[#allocation7 + $0x260] sm:$0xff]  ;;  %v393_v31 = vld [vmem:[#allocation7 + $0x358] sm:$0xff] }
  0x33   :  { %446 = vmatpush.msra.mxu1 %v309_v54  ;;  %468 = vmatpush.msra.mxu2 %v323_v55  ;;  %v379_v30 = vld [vmem:[#allocation7 + $0x2e8] sm:$0xff]  ;;  %v410_v32 = vld [vmem:[#allocation7 + $0x3e0] sm:$0xff]  ;;  %v361_v33 = vld [vmem:[#allocation7 + $0x258] sm:$0xff] }
  0x34   :  { %487 = vmatpush.msra.mxu3 %v340_v56  ;;  %428 = vmatpush.msra.mxu0 %v291_v57  ;;  %v378_v34 = vld [vmem:[#allocation7 + $0x2e0] sm:$0xff]  ;;  %v392_v35 = vld [vmem:[#allocation7 + $0x350] sm:$0xff]  ;;  %v409_v36 = vld [vmem:[#allocation7 + $0x3d8] sm:$0xff] }
  0x35   :  { %447 = vmatpush.msra.mxu1 %v308_v58  ;;  %469 = vmatpush.msra.mxu2 %v322_v59  ;;  %v360_v37 = vld [vmem:[#allocation7 + $0x250] sm:$0xff]  ;;  %v377_v38 = vld [vmem:[#allocation7 + $0x2d8] sm:$0xff]  ;;  %v391_v39 = vld [vmem:[#allocation7 + $0x348] sm:$0xff] }
  0x36   :  { %488 = vmatpush.msra.mxu3 %v339_v60  ;;  %429 = vmatpush.msra.mxu0 %v290_v61  ;;  %v408_v40 = vld [vmem:[#allocation7 + $0x3d0] sm:$0xff]  ;;  %v359_v41 = vld [vmem:[#allocation7 + $0x248] sm:$0xff]  ;;  %v390_v43 = vld [vmem:[#allocation7 + $0x340] sm:$0xff] }
  0x37   :  { %448 = vmatpush.msra.mxu1 %v307_v62  ;;  %470 = vmatpush.msra.mxu2 %v321_v63  ;;  %v376_v42 = vld [vmem:[#allocation7 + $0x2d0] sm:$0xff]  ;;  %v407_v44 = vld [vmem:[#allocation7 + $0x3c8] sm:$0xff]  ;;  %v358_v45 = vld [vmem:[#allocation7 + $0x240] sm:$0xff] }
  0x38   :  { %489 = vmatpush.msra.mxu3 %v338_v0  ;;  %430 = vmatpush.msra.mxu0 %v289_v1  ;;  %v375_v46 = vld [vmem:[#allocation7 + $0x2c8] sm:$0xff]  ;;  %v389_v47 = vld [vmem:[#allocation7 + $0x338] sm:$0xff]  ;;  %v406_v48 = vld [vmem:[#allocation7 + $0x3c0] sm:$0xff] }
  0x39   :  { %449 = vmatpush.msra.mxu1 %v306_v2  ;;  %471 = vmatpush.msra.mxu2 %v320_v3  ;;  %v357_v49 = vld [vmem:[#allocation7 + $0x238] sm:$0xff]  ;;  %v374_v50 = vld [vmem:[#allocation7 + $0x2c0] sm:$0xff]  ;;  %v388_v51 = vld [vmem:[#allocation7 + $0x330] sm:$0xff] }
  0x3a   :  { %490 = vmatpush.msra.mxu3 %v337_v4  ;;  %431 = vmatpush.msra.mxu0 %v288_v5  ;;  %v405_v52 = vld [vmem:[#allocation7 + $0x3b8] sm:$0xff]  ;;  %v356_v53 = vld [vmem:[#allocation7 + $0x230] sm:$0xff]  ;;  %v387_v55 = vld [vmem:[#allocation7 + $0x328] sm:$0xff] }
  0x3b   :  { %450 = vmatpush.msra.mxu1 %v305_v6  ;;  %472 = vmatpush.msra.mxu2 %v319_v7  ;;  %v373_v54 = vld [vmem:[#allocation7 + $0x2b8] sm:$0xff]  ;;  %v404_v56 = vld [vmem:[#allocation7 + $0x3b0] sm:$0xff]  ;;  %v355_v57 = vld [vmem:[#allocation7 + $0x228] sm:$0xff] }
  0x3c   :  { %491 = vmatpush.msra.mxu3 %v336_v8  ;;  %432 = vmatpush.msra.mxu0 %v287_v9  ;;  %v372_v58 = vld [vmem:[#allocation7 + $0x2b0] sm:$0xff]  ;;  %v386_v59 = vld [vmem:[#allocation7 + $0x320] sm:$0xff]  ;;  %v403_v60 = vld [vmem:[#allocation7 + $0x3a8] sm:$0xff] }
  0x3d   :  { %451 = vmatpush.msra.mxu1 %v304_v10  ;;  %473 = vmatpush.msra.mxu2 %v318_v11  ;;  %v354_v61 = vld [vmem:[#allocation7 + $0x220] sm:$0xff]  ;;  %v371_v62 = vld [vmem:[#allocation7 + $0x2a8] sm:$0xff]  ;;  %v385_v63 = vld [vmem:[#allocation7 + $0x318] sm:$0xff] }
  0x3e   :  { %492 = vmatpush.msra.mxu3 %v335_v12  ;;  %433 = vmatpush.msra.mxu0 %v286_v14  ;;  %v402_v0 = vld [vmem:[#allocation7 + $0x3a0] sm:$0xff]  ;;  %v353_v1 = vld [vmem:[#allocation7 + $0x218] sm:$0xff]  ;;  %v384_v3 = vld [vmem:[#allocation7 + $0x310] sm:$0xff] }
  0x3f   :  { %538 = vmatpush.msrb.mxu2 %v397_v13  ;;  %452 = vmatpush.msra.mxu1 %v303_v15  ;;  %v370_v2 = vld [vmem:[#allocation7 + $0x2a0] sm:$0xff]  ;;  %v401_v4 = vld [vmem:[#allocation7 + $0x398] sm:$0xff]  ;;  %v352_v5 = vld [vmem:[#allocation7 + $0x210] sm:$0xff] }
  0x40   :  { %493 = vmatpush.msra.mxu3 %v334_v16  ;;  %498 = vmatpush.msrb.mxu0 %v365_v17  ;;  %v369_v6 = vld [vmem:[#allocation7 + $0x298] sm:$0xff]  ;;  %v383_v7 = vld [vmem:[#allocation7 + $0x308] sm:$0xff]  ;;  %v400_v8 = vld [vmem:[#allocation7 + $0x390] sm:$0xff] }
  0x41   :  { %539 = vmatpush.msrb.mxu2 %v396_v18  ;;  %453 = vmatpush.msra.mxu1 %v302_v20  ;;  %v351_v9 = vld [vmem:[#allocation7 + $0x208] sm:$0xff]  ;;  %v368_v10 = vld [vmem:[#allocation7 + $0x290] sm:$0xff]  ;;  %v382_v11 = vld [vmem:[#allocation7 + $0x300] sm:$0xff] }
  0x42   :  { %558 = vmatpush.msrb.mxu3 %v413_v19  ;;  %499 = vmatpush.msrb.mxu0 %v364_v21  ;;  %v399_v12 = vld [vmem:[#allocation7 + $0x388] sm:$0xff]  ;;  %v350_v13 = vld [vmem:[#allocation7 + $0x200] sm:$0xff]  ;;  %v96_v17 = vld [vmem:[#allocation6] sm:$0xff] }
  0x43   :  { %518 = vmatpush.msrb.mxu1 %v381_v22  ;;  %540 = vmatpush.msrb.mxu2 %v395_v23  ;;  %v367_v14 = vld [vmem:[#allocation7 + $0x288] sm:$0xff]  ;;  %v398_v15 = vld [vmem:[#allocation7 + $0x380] sm:$0xff]  ;;  %v98_v18 = vperm.slane %v96_v17, 0  ;;  %v99_v19 = vperm.slane %v96_v17, 1  ;;  %v100_v20 = vperm.slane %v96_v17, 2  ;;  %v101_v21 = vperm.slane %v96_v17, 3 }
  0x44   :  { %559 = vmatpush.msrb.mxu3 %v412_v24  ;;  %500 = vmatpush.msrb.mxu0 %v363_v25  ;;  %v366_v16 = vld [vmem:[#allocation7 + $0x280] sm:$0xff] }
  0x45   :  { %519 = vmatpush.msrb.mxu1 %v380_v26  ;;  %541 = vmatpush.msrb.mxu2 %v394_v27 }
  0x46   :  { %560 = vmatpush.msrb.mxu3 %v411_v28  ;;  %501 = vmatpush.msrb.mxu0 %v362_v29 }
  0x47   :  { %520 = vmatpush.msrb.mxu1 %v379_v30  ;;  %542 = vmatpush.msrb.mxu2 %v393_v31 }
  0x48   :  { %561 = vmatpush.msrb.mxu3 %v410_v32  ;;  %502 = vmatpush.msrb.mxu0 %v361_v33 }
  0x49   :  { %521 = vmatpush.msrb.mxu1 %v378_v34  ;;  %543 = vmatpush.msrb.mxu2 %v392_v35  ;;  %v102_v34 = vperm.slane %v96_v17, 4  ;;  %v103_v35 = vperm.slane %v96_v17, 5 }
  0x4a   :  { %562 = vmatpush.msrb.mxu3 %v409_v36  ;;  %503 = vmatpush.msrb.mxu0 %v360_v37  ;;  %v104_v36 = vperm.slane %v96_v17, 6  ;;  %v105_v37 = vperm.slane %v96_v17, 7 }
  0x4b   :  { %522 = vmatpush.msrb.mxu1 %v377_v38  ;;  %544 = vmatpush.msrb.mxu2 %v391_v39 }
  0x4c   :  { %563 = vmatpush.msrb.mxu3 %v408_v40  ;;  %504 = vmatpush.msrb.mxu0 %v359_v41 }
  0x4d   :  { %523 = vmatpush.msrb.mxu1 %v376_v42  ;;  %545 = vmatpush.msrb.mxu2 %v390_v43 }
  0x4e   :  { %564 = vmatpush.msrb.mxu3 %v407_v44  ;;  %505 = vmatpush.msrb.mxu0 %v358_v45 }
  0x4f   :  { %524 = vmatpush.msrb.mxu1 %v375_v46  ;;  %546 = vmatpush.msrb.mxu2 %v389_v47 }
  0x50   :  { %565 = vmatpush.msrb.mxu3 %v406_v48  ;;  %506 = vmatpush.msrb.mxu0 %v357_v49 }
  0x51   :  { %525 = vmatpush.msrb.mxu1 %v374_v50  ;;  %547 = vmatpush.msrb.mxu2 %v388_v51  ;;  %v626_v50 = vld [vmem:[%s801_s4] ss:$0 sm:$0xff] }
  0x52   :  { %566 = vmatpush.msrb.mxu3 %v405_v52  ;;  %507 = vmatpush.msrb.mxu0 %v356_v53 }
  0x53   :  { %526 = vmatpush.msrb.mxu1 %v373_v54  ;;  %548 = vmatpush.msrb.mxu2 %v387_v55 }
  0x54   :  { %567 = vmatpush.msrb.mxu3 %v404_v56  ;;  %508 = vmatpush.msrb.mxu0 %v355_v57 }
  0x55   :  { %527 = vmatpush.msrb.mxu1 %v372_v58  ;;  %549 = vmatpush.msrb.mxu2 %v386_v59 }
  0x56   :  { %568 = vmatpush.msrb.mxu3 %v403_v60  ;;  %509 = vmatpush.msrb.mxu0 %v354_v61 }
  0x57   :  { %528 = vmatpush.msrb.mxu1 %v371_v62  ;;  %550 = vmatpush.msrb.mxu2 %v385_v63 }
  0x58   :  { %569 = vmatpush.msrb.mxu3 %v402_v0  ;;  %510 = vmatpush.msrb.mxu0 %v353_v1 }
  0x59   :  { %529 = vmatpush.msrb.mxu1 %v370_v2  ;;  %551 = vmatpush.msrb.mxu2 %v384_v3 }
  0x5a   :  { %570 = vmatpush.msrb.mxu3 %v401_v4  ;;  %511 = vmatpush.msrb.mxu0 %v352_v5 }
  0x5b   :  { %530 = vmatpush.msrb.mxu1 %v369_v6  ;;  %552 = vmatpush.msrb.mxu2 %v383_v7 }
  0x5c   :  { %571 = vmatpush.msrb.mxu3 %v400_v8  ;;  %512 = vmatpush.msrb.mxu0 %v351_v9 }
  0x5d   :  { %531 = vmatpush.msrb.mxu1 %v368_v10  ;;  %553 = vmatpush.msrb.mxu2 %v382_v11 }
  0x5e   :  { %572 = vmatpush.msrb.mxu3 %v399_v12  ;;  %513 = vmatpush.msrb.mxu0 %v350_v13 }
  0x5f   :  { %532 = vmatpush.msrb.mxu1 %v367_v14 }
  0x60   :  { %573 = vmatpush.msrb.mxu3 %v398_v15 }
  0x61   :  { %533 = vmatpush.msrb.mxu1 %v366_v16 }
  0x98   :  { %v135_v22 = vpop.f32.mrf.mxu0 }
  0x99   :  { %v155_v23 = vpop.f32.mrf.mxu1  ;;  %v136_v25 = vadd.f32 %v135_v22, %v98_v18 }
  0x9a   :  { %v175_v24 = vpop.f32.mrf.mxu2  ;;  %v195_v26 = vpop.f32.mrf.mxu3  ;;  %v156_v27 = vadd.f32 %v155_v23, %v99_v19 }
  0x9b   :  { %v176_v28 = vadd.f32 %v175_v24, %v100_v20  ;;  %v196_v29 = vadd.f32 %v195_v26, %v101_v21  ;;  %v278_v30 = vmax.f32 %v136_v25, 0.0 }
  0x9c   :  { %v279_v31 = vmax.f32 %v156_v27, 0.0 }
  0x9d   :  { %v280_v32 = vmax.f32 %v176_v28, 0.0  ;;  %v281_v33 = vmax.f32 %v196_v29, 0.0  ;;  %434 = vmatmul.f32.vlgmr.msra.gmra.mxu0 %v278_v30 }
  0x9e   :  { %454 = vmatmul.f32.vlgmr.msra.gmra.mxu1 %v279_v31 }
  0x9f   :  { %474 = vmatmul.f32.vlgmr.msra.gmra.mxu2 %v280_v32  ;;  %494 = vmatmul.f32.vlgmr.msra.gmra.mxu3 %v281_v33 }
  0xa0   :  { %v215_v38 = vpop.f32.mrf.mxu0 }
  0xa1   :  { %v235_v39 = vpop.f32.mrf.mxu1  ;;  %v216_v41 = vadd.f32 %v215_v38, %v102_v34 }
  0xa2   :  { %v255_v40 = vpop.f32.mrf.mxu2  ;;  %v275_v42 = vpop.f32.mrf.mxu3  ;;  %v236_v43 = vadd.f32 %v235_v39, %v103_v35 }
  0xa3   :  { %v256_v44 = vadd.f32 %v255_v40, %v104_v36  ;;  %v276_v45 = vadd.f32 %v275_v42, %v105_v37  ;;  %v282_v46 = vmax.f32 %v216_v41, 0.0 }
  0xa4   :  { %v283_v47 = vmax.f32 %v236_v43, 0.0 }
  0xa5   :  { %v284_v48 = vmax.f32 %v256_v44, 0.0  ;;  %v285_v49 = vmax.f32 %v276_v45, 0.0  ;;  %514 = vmatmul.f32.vlgmr.msrb.gmra.mxu0 %v282_v46 }
  0xa6   :  { %534 = vmatmul.f32.vlgmr.msrb.gmra.mxu1 %v283_v47 }
  0xa7   :  { %554 = vmatmul.f32.vlgmr.msrb.gmra.mxu2 %v284_v48  ;;  %574 = vmatmul.f32.vlgmr.msrb.gmra.mxu3 %v285_v49 }
 0x11a   :  { %v435_v51 = vpop.f32.mrf.mxu0 }
 0x11b   :  { %v436_v52 = vadd.f32 %v626_v50, %v435_v51  ;;  %v455_v53 = vpop.f32.mrf.mxu1 }
 0x11d   :  { %v456_v54 = vadd.f32 %v455_v53, %v436_v52 }
 0x122   :  { %v475_v55 = vpop.f32.mrf.mxu2  ;;  %v495_v56 = vpop.f32.mrf.mxu3 }
 0x123   :  { %v476_v57 = vadd.f32 %v475_v55, %v456_v54  ;;  %v515_v58 = vpop.f32.mrf.mxu0  ;;  %v535_v60 = vpop.f32.mrf.mxu1 }
 0x125   :  { %v496_v59 = vadd.f32 %v495_v56, %v476_v57 }
 0x127   :  { %v516_v61 = vadd.f32 %v515_v58, %v496_v59 }
 0x129   :  { %v536_v62 = vadd.f32 %v535_v60, %v516_v61 }
 0x12a   :  { %v555_v63 = vpop.f32.mrf.mxu2  ;;  %v575_v0 = vpop.f32.mrf.mxu3 }
 0x12b   :  { %v556_v1 = vadd.f32 %v555_v63, %v536_v62 }
 0x12d   :  { %v576_v2 = vadd.f32 %v575_v0, %v556_v1 }
 0x12f   :  { %v617_v3 = vmul.f32 -1.442695, %v576_v2 }
 0x131   :  { %627 = vpow2.f32 %v617_v3 }
 0x137   :  { %v628_v4 = vpop.eup %627 }
 0x138   :  { %v581_v5 = vadd.f32 1.0, %v628_v4 }
 0x13a   :  { %629 = vrcp.f32 %v581_v5  ;;  %v593_v9 = vand.u32 2147483648, %v581_v5  ;;  %v591_v11 = vand.u32 2147483647, %v581_v5  ;;  %vm587_vm2 = vweird.f32 %v581_v5 }
 0x13c   :  { %v594_v13 = vor.u32 1.1754944e-38, %v593_v9  ;;  %vm592_vm4 = vcmp.eq.f32.partialorder %v591_v11, 8.507059e+37 }
 0x140   :  { %v630_v6 = vpop.eup %629 }
 0x141   :  { %v583_v7 = vmul.f32 %v630_v6, %v581_v5  ;;  %vm588_vm1 = vweird.f32 %v630_v6 }
 0x142   :  { %vm589_vm3 = vmor %vm587_vm2, %vm588_vm1 }
 0x143   :  { %v584_v8 = vsub.f32 1.0, %v583_v7 }
 0x145   :  { %v585_v10 = vmul.f32 %v630_v6, %v584_v8 }
 0x147   :  { %v586_v12 = vadd.f32 %v630_v6, %v585_v10 }
 0x149   :  { %v590_v14 = vsel %vm589_vm3, %v630_v6, %v586_v12 }
 0x14a   :  { %v595_v15 = vsel %vm592_vm4, %v594_v13, %v590_v14 }
 0x14b   :  { %597 = vadd.xlane.f32.xlu0 %v595_v15 }
 0x1be   :  { %v598_v16 = vpop.xlane.xlu0 %597 }
 0x1bf   :  { %v599_v17 = vmul.f32 0.033333335, %v598_v16 }
 0x1c1   :  { %601 = vst.msk [vmem:[%s802_s5] sm:$0xff] %vm600_vm5, %v599_v17 }
 0x1c2   :  { %606 = vsyncpa [#allocation3], 1 }
 0x1c3   :  { %607 = vsyncpa [#allocation5], 1 }
 0x1c4   :  { %608 = vsyncpa [#allocation8], 1 }

</bundles_post_ra>
